<compile_context>
chip_gen: v7x
topology: tpu7x:2x2x1
jax: 0.10.0
libtpu: 0.0.40
codegen_flags: <defaults>
</compile_context>

<pallas_src>
import jax
import jax.numpy as jnp
from jax.experimental import pallas as pl
from jax.experimental.pallas import tpu as pltpu


# ----------------------------------------------------------------------------
# Kernel: one batch-block per grid step.  Softmax axis (T) stays whole.
# ----------------------------------------------------------------------------
def unimodal_attention_kernel(x_ref, w1_ref, b1_ref, w2_ref,
                              attended_ref, attn_ref):
    bb, T, D = x_ref.shape
    H = w1_ref.shape[1]

    x = x_ref[...]                                   # (bb, T, D), possibly bf16
    # Fold batch & time into one MXU M-dim.  Layout-preserving collapse because
    # T is a multiple of the sublane count (8).
    x2 = x.reshape(bb * T, D)

    # First projection: single-pass MXU matmul (default precision), f32 accumulate.
    h = jnp.dot(x2, w1_ref[...], preferred_element_type=jnp.float32)
    h = jnp.tanh(h + b1_ref[...])                    # (bb*T, H), f32

    # Score projection (out_features = 1): an N=1 matmul wastes the systolic
    # array, so do it as a VPU multiply + lane reduce instead.
    s = jnp.sum(h * w2_ref[...], axis=-1, keepdims=True)        # (bb*T, 1)
    # NOTE: b2 is intentionally omitted — a constant shift before the softmax
    # over T changes neither attn nor attended.
    s = s.reshape(bb, T, 1)                          # sublane split (T % 8 == 0)

    # Softmax over the time axis (dim=1 in the PyTorch module), f32.
    s = s - jnp.max(s, axis=1, keepdims=True)
    e = jnp.exp(s)
    denom = jnp.sum(e, axis=1, keepdims=True)
    attn = e * pl.reciprocal(denom, approx=True)     # EUP reciprocal, ~free

    # attn is lane-width-1 by construction; keeping it (bb, T, 1) avoids a
    # sublane->lane relayout.  TODO(synk): for very large B*T, emit attn as a
    # lane-dense (bb, T) slab instead (masked vst.msk stores become the lever).
    attn_ref[...] = attn

    # attended[b, 0, :] = sum_t attn[b, t] * x[b, t, :]   (== bmm(attn^T, x))
    attended_ref[...] = jnp.sum(attn * x, axis=1, keepdims=True
                                ).astype(attended_ref.dtype)


# ----------------------------------------------------------------------------
# Wrapper.  Weights are taken in PyTorch nn.Linear layout:
#   w1: (H, D) = attention[0].weight     b1: (H,) = attention[0].bias
#   w2: (1, H) = attention[2].weight     b2: (1,) = attention[2].bias (unused)
# ----------------------------------------------------------------------------
def unimodal_attention(x, w1, b1, w2, b2=None, *, block_b=None,
                       cast_to_bf16=True):
    B, T, D = x.shape
    H = w1.shape[0]
    assert w1.shape == (H, D), w1.shape
    # TODO(synk): pad + mask the time axis if T % 8 != 0 (kept aligned here so
    # the in-kernel reshapes are pure sublane splits, no relayout).
    assert T % 8 == 0, "time axis must be a multiple of 8 (sublane-aligned)"
    del b2  # mathematically dead for both outputs (softmax shift invariance)

    # bf16 inputs halve the dominant HBM traffic (x); accumulation stays f32.
    in_dtype = jnp.bfloat16 if cast_to_bf16 else x.dtype
    x_in = x.astype(in_dtype)
    w1_in = jnp.transpose(w1).astype(in_dtype)       # (D, H), one-time, tiny
    b1_in = b1.reshape(1, H).astype(jnp.float32)
    w2_in = w2.reshape(1, H).astype(jnp.float32)

    # Batch block sizing: keep double-buffered x block + h intermediate +
    # outputs well under the smallest scoped-VMEM default (16 MiB on v5e,
    # and under v7x's 64 MiB physical / 32 MiB default per core).
    if block_b is None:
        budget = 8 * 1024 * 1024
        per_b = (2 * T * D * x_in.dtype.itemsize      # double-buffered x block
                 + T * H * 4                           # h intermediate
                 + (T + D) * 4)                        # outputs
        block_b = max(1, min(B, budget // max(per_b, 1)))
        while B % block_b:
            block_b -= 1
    assert B % block_b == 0, (B, block_b)
    grid = (B // block_b,)

    cost = pl.CostEstimate(
        flops=2 * B * T * D * H + 2 * B * T * H + 2 * B * T * D,
        transcendentals=B * T * (H + 1),
        bytes_accessed=(x_in.size * x_in.dtype.itemsize
                        + w1_in.size * w1_in.dtype.itemsize
                        + (b1_in.size + w2_in.size) * 4
                        + (B * D + B * T) * 4))

    # x / outputs blocked over batch; weights resident (constant index_maps).
    # TODO(synk): if the x DMA is still exposed at small T*D blocks, add
    # pipeline_mode=pl.Buffered(3) on the x BlockSpec.
    x_spec = pl.BlockSpec((block_b, T, D), lambda b: (b, 0, 0))
    w1_spec = pl.BlockSpec((D, H), lambda b: (0, 0))
    b1_spec = pl.BlockSpec((1, H), lambda b: (0, 0))
    w2_spec = pl.BlockSpec((1, H), lambda b: (0, 0))
    attended_spec = pl.BlockSpec((block_b, 1, D), lambda b: (b, 0, 0))
    attn_spec = pl.BlockSpec((block_b, T, 1), lambda b: (b, 0, 0))

    attended3, attn = pl.pallas_call(
        unimodal_attention_kernel,
        grid=grid,
        in_specs=[x_spec, w1_spec, b1_spec, w2_spec],
        out_specs=(attended_spec, attn_spec),
        out_shape=(jax.ShapeDtypeStruct((B, 1, D), jnp.float32),
                   jax.ShapeDtypeStruct((B, T, 1), jnp.float32)),
        compiler_params=pltpu.CompilerParams(
            dimension_semantics=("parallel",)),      # megacore sharding on v7x
        cost_estimate=cost,
    )(x_in, w1_in, b1_in, w2_in)

    return attended3[:, 0, :], attn                   # (B, D), (B, T, 1)


# ----------------------------------------------------------------------------
# Pure-JAX reference (sanity check), PyTorch-layout weights.
# ----------------------------------------------------------------------------
def reference_forward(x, w1, b1, w2, b2):
    h = jnp.tanh(jnp.dot(x, w1.T) + b1)               # (B, T, H)
    s = jnp.dot(h, w2.T) + b2                         # (B, T, 1)
    attn = jax.nn.softmax(s, axis=1)                  # (B, T, 1)
    attended = jnp.sum(attn * x, axis=1)              # (B, D)
    return attended, attn


# ----------------------------------------------------------------------------
if __name__ == "__main__":
    # Small shapes consistent with the module: (batch, seq, input_dim), hidden_dim.
    B, T, D, H = 2, 16, 64, 32

    key = jax.random.PRNGKey(0)
    kx, kw1, kb1, kw2, kb2 = jax.random.split(key, 5)

    # nn.Linear default init: U(-1/sqrt(fan_in), 1/sqrt(fan_in)); PyTorch layouts.
    bound1 = float(D) ** -0.5
    bound2 = float(H) ** -0.5
    x = jax.random.normal(kx, (B, T, D), jnp.float32)
    w1 = jax.random.uniform(kw1, (H, D), jnp.float32, -bound1, bound1)
    b1 = jax.random.uniform(kb1, (H,), jnp.float32, -bound1, bound1)
    w2 = jax.random.uniform(kw2, (1, H), jnp.float32, -bound2, bound2)
    b2 = jax.random.uniform(kb2, (1,), jnp.float32, -bound2, bound2)

    # block_b=1 -> grid=(2,) so the batch-parallel pipeline is actually exercised.
    attended, attn = unimodal_attention(x, w1, b1, w2, b2, block_b=1)
    attended, attn = jax.block_until_ready((attended, attn))

    ref_attended, ref_attn = reference_forward(x, w1, b1, w2, b2)
    assert attended.shape == (B, D), attended.shape
    assert attn.shape == (B, T, 1), attn.shape
    assert jnp.allclose(attn, ref_attn, rtol=1e-2, atol=1e-2), "attn mismatch"
    assert jnp.allclose(attended, ref_attended, rtol=1e-2, atol=1e-2), "attended mismatch"

    print("KERNEL_OK")
</pallas_src>

<mosaic_0001>
module attributes {stable_mosaic.version = 11 : i64} {
  func.func @unimodal_attention_kernel(%arg0: i32, %arg1: memref<1x16x64xbf16, #tpu.memory_space<vmem>>, %arg2: memref<64x32xbf16, #tpu.memory_space<vmem>>, %arg3: memref<1x32xf32, #tpu.memory_space<vmem>>, %arg4: memref<1x32xf32, #tpu.memory_space<vmem>>, %arg5: memref<1x1x64xf32, #tpu.memory_space<vmem>>, %arg6: memref<1x16x1xf32, #tpu.memory_space<vmem>>) attributes {dimension_semantics = [#tpu.dimension_semantics<parallel>], iteration_bounds = array<i64: 2>, scalar_prefetch = 0 : i64, scratch_operands = 0 : i64, tpu.core_type = #tpu.core_type<tc>, window_params = [{transform_indices = @transform_0, window_bounds = array<i64: 1, 16, 64>}, {pipeline_mode = #tpu.pipeline_mode<synchronous>, transform_indices = @transform_1, window_bounds = array<i64: 64, 32>}, {pipeline_mode = #tpu.pipeline_mode<synchronous>, transform_indices = @transform_2, window_bounds = array<i64: 1, 32>}, {pipeline_mode = #tpu.pipeline_mode<synchronous>, transform_indices = @transform_3, window_bounds = array<i64: 1, 32>}, {transform_indices = @transform_4, window_bounds = array<i64: 1, 1, 64>}, {transform_indices = @transform_5, window_bounds = array<i64: 1, 16, 1>}]} {
    %c0 = arith.constant 0 : index
    %c0_0 = arith.constant 0 : index
    %c0_1 = arith.constant 0 : index
    %0 = vector.load %arg1[%c0, %c0_0, %c0_1] : memref<1x16x64xbf16, #tpu.memory_space<vmem>>, vector<1x16x64xbf16>
    %1 = vector.shape_cast %0 : vector<1x16x64xbf16> to vector<16x64xbf16>
    %c0_2 = arith.constant 0 : index
    %c0_3 = arith.constant 0 : index
    %2 = vector.load %arg2[%c0_2, %c0_3] : memref<64x32xbf16, #tpu.memory_space<vmem>>, vector<64x32xbf16>
    %cst = arith.constant dense<0.000000e+00> : vector<16x32xf32>
    %3 = tpu.matmul %1, %2, %cst {dimension_numbers = #tpu.dot_dimension_numbers<[1], [0], [0], [1], [0, 0, 1, 1], [], []>} : vector<16x64xbf16>, vector<64x32xbf16>, vector<16x32xf32> -> vector<16x32xf32>
    %c0_4 = arith.constant 0 : index
    %c0_5 = arith.constant 0 : index
    %4 = vector.load %arg3[%c0_4, %c0_5] : memref<1x32xf32, #tpu.memory_space<vmem>>, vector<1x32xf32>
    %5 = vector.broadcast %4 : vector<1x32xf32> to vector<16x32xf32>
    %6 = arith.addf %3, %5 : vector<16x32xf32>
    %7 = math.tanh %6 : vector<16x32xf32>
    %c0_6 = arith.constant 0 : index
    %c0_7 = arith.constant 0 : index
    %8 = vector.load %arg4[%c0_6, %c0_7] : memref<1x32xf32, #tpu.memory_space<vmem>>, vector<1x32xf32>
    %9 = vector.broadcast %8 : vector<1x32xf32> to vector<16x32xf32>
    %10 = arith.mulf %7, %9 : vector<16x32xf32>
    %cst_8 = arith.constant dense<0.000000e+00> : vector<16xf32>
    %11 = vector.multi_reduction <add>, %10, %cst_8 [1] : vector<16x32xf32> to vector<16xf32>
    %12 = vector.shape_cast %11 : vector<16xf32> to vector<16x1xf32>
    %13 = vector.shape_cast %12 : vector<16x1xf32> to vector<1x16x1xf32>
    %cst_9 = arith.constant dense<0xFF800000> : vector<1x1xf32>
    %14 = vector.multi_reduction <maximumf>, %13, %cst_9 [1] : vector<1x16x1xf32> to vector<1x1xf32>
    %15 = vector.shape_cast %14 : vector<1x1xf32> to vector<1x1x1xf32>
    %16 = vector.broadcast %15 : vector<1x1x1xf32> to vector<1x16x1xf32>
    %17 = arith.subf %13, %16 : vector<1x16x1xf32>
    %18 = math.exp %17 : vector<1x16x1xf32>
    %cst_10 = arith.constant dense<0.000000e+00> : vector<1x1xf32>
    %19 = vector.multi_reduction <add>, %18, %cst_10 [1] : vector<1x16x1xf32> to vector<1x1xf32>
    %20 = vector.shape_cast %19 : vector<1x1xf32> to vector<1x1x1xf32>
    %21 = tpu.reciprocal %20 {approx = true} : vector<1x1x1xf32> -> vector<1x1x1xf32>
    %22 = vector.broadcast %21 : vector<1x1x1xf32> to vector<1x16x1xf32>
    %23 = arith.mulf %18, %22 : vector<1x16x1xf32>
    %c0_11 = arith.constant 0 : index
    %c0_12 = arith.constant 0 : index
    %c0_13 = arith.constant 0 : index
    %24 = vector.load %arg6[%c0_11, %c0_12, %c0_13] : memref<1x16x1xf32, #tpu.memory_space<vmem>>, vector<1x16x1xf32>
    tpu.vector_store %arg6[%c0_11, %c0_12, %c0_13], %23 {strides = array<i32>} : memref<1x16x1xf32, #tpu.memory_space<vmem>>, vector<1x16x1xf32>,
    %25 = arith.extf %0 : vector<1x16x64xbf16> to vector<1x16x64xf32>
    %26 = vector.broadcast %23 : vector<1x16x1xf32> to vector<1x16x64xf32>
    %27 = arith.mulf %26, %25 : vector<1x16x64xf32>
    %cst_14 = arith.constant dense<0.000000e+00> : vector<1x64xf32>
    %28 = vector.multi_reduction <add>, %27, %cst_14 [1] : vector<1x16x64xf32> to vector<1x64xf32>
    %29 = vector.shape_cast %28 : vector<1x64xf32> to vector<1x1x64xf32>
    %c0_15 = arith.constant 0 : index
    %c0_16 = arith.constant 0 : index
    %c0_17 = arith.constant 0 : index
    %30 = vector.load %arg5[%c0_15, %c0_16, %c0_17] : memref<1x1x64xf32, #tpu.memory_space<vmem>>, vector<1x1x64xf32>
    tpu.vector_store %arg5[%c0_15, %c0_16, %c0_17], %29 {strides = array<i32>} : memref<1x1x64xf32, #tpu.memory_space<vmem>>, vector<1x1x64xf32>,
    return
  }
  func.func @transform_0(%arg0: i32) -> (i32, i32, i32) {
    %c0_i32 = arith.constant 0 : i32
    %c0_i32_0 = arith.constant 0 : i32
    %c0_i32_1 = arith.constant 0 : i32
    return %arg0, %c0_i32, %c0_i32_0 : i32, i32, i32
  }
  func.func @transform_1(%arg0: i32) -> (i32, i32) {
    %c0_i32 = arith.constant 0 : i32
    %c0_i32_0 = arith.constant 0 : i32
    %c0_i32_1 = arith.constant 0 : i32
    return %c0_i32, %c0_i32_0 : i32, i32
  }
  func.func @transform_2(%arg0: i32) -> (i32, i32) {
    %c0_i32 = arith.constant 0 : i32
    %c0_i32_0 = arith.constant 0 : i32
    %c0_i32_1 = arith.constant 0 : i32
    return %c0_i32, %c0_i32_0 : i32, i32
  }
  func.func @transform_3(%arg0: i32) -> (i32, i32) {
    %c0_i32 = arith.constant 0 : i32
    %c0_i32_0 = arith.constant 0 : i32
    %c0_i32_1 = arith.constant 0 : i32
    return %c0_i32, %c0_i32_0 : i32, i32
  }
  func.func @transform_4(%arg0: i32) -> (i32, i32, i32) {
    %c0_i32 = arith.constant 0 : i32
    %c0_i32_0 = arith.constant 0 : i32
    %c0_i32_1 = arith.constant 0 : i32
    return %arg0, %c0_i32, %c0_i32_0 : i32, i32, i32
  }
  func.func @transform_5(%arg0: i32) -> (i32, i32, i32) {
    %c0_i32 = arith.constant 0 : i32
    %c0_i32_0 = arith.constant 0 : i32
    %c0_i32_1 = arith.constant 0 : i32
    return %arg0, %c0_i32, %c0_i32_0 : i32, i32, i32
  }
}

</mosaic_0001>

<bundles_post_ra>
// kernel: tpu_custom_call.1
= control target key start
LH: loop header
LB: loop body
LE: loop exit
PB: predicated region body
PF: predicated region fallthrough
CT: control target
= control target key end

     0   :  { %11 = vsyncpa [#allocation3], 0  ;;  %s807_s0 = inlined_call_operand.vmem [shape: bf16[2,16,64], index: 0, kind: input, shape index: {}]   ;;  %s808_s1 = inlined_call_operand.vmem [shape: bf16[64,32], index: 1, kind: input, shape index: {}]   ;;  %s809_s2 = inlined_call_operand.vmem [shape: f32[1,32], index: 2, kind: input, shape index: {}]   ;;  %s810_s3 = inlined_call_operand.vmem [shape: f32[1,32], index: 3, kind: input, shape index: {}]   ;;  %s811_s4 = inlined_call_operand.hbm [shape: f32[2,1,64], index: 4, kind: output, shape index: {0}]   ;;  %s812_s5 = inlined_call_operand.vmem [shape: f32[2,16,1], index: 5, kind: output, shape index: {1}]  }
   0x1   :  { %13 = vsyncpa [#allocation3 + $0x1], 0  ;;  %s679_s18 = smov 0   ;;  %s681_s19 = smov 0  }
   0x2   :  { %s683_s20 = smov 0   ;;  %s685_s21 = smov 0  }
   0x3 LB: > { %s700_s22 = sadd.s32 4294967295, %s644_s21   ;;  %s487_s23 = sadd.s32 4294967294, %s644_s21   ;;  %s644_s21 = sphi %s685_s21, %s818_s21   ;;  %s640_s20 = sphi %s683_s20, %s817_s20   ;;  %s636_s19 = sphi %s681_s19, %s816_s19   ;;  %s632_s18 = sphi %s679_s18, %s815_s18  }
   0x4   : > { %s704_s24 = sadd.s32 1, %s644_s21   ;;  %s115_s25 = sadd.s32 1, %s640_s20 }
   0x5   : > { %s112_s26 = ssub.s32 %s644_s21, %s704_s24  ;;  %p125_p0 = scmp.ne.s32.totalorder %s640_s20, %s636_s19 }
   0x6   : > { %p113_p1 = scmp.eq.s32.totalorder %s112_s26, 0  ;;  %p126_p2 = scmp.eq.s32.totalorder %s700_s22, 1 }
   0x7   : > { %p131_p3 = scmp.ne.s32.totalorder %s636_s19, %s632_s18  ;;  %p132_p4 = scmp.eq.s32.totalorder %s487_s23, 1 }
   0x8   : > { %s715_s27 = scalar_select %p113_p1, %s640_s20, %s115_s25  }
   0x9   : > { %p717_p5 = por %p126_p2, %p125_p0  ;;  %p721_p6 = por %p132_p4, %p131_p3 }
   0xa   : > { %p490_p7 = scmp.ge.s32.totalorder %s644_s21, 1  ;;  %p193_p8 = scmp.lt.s32.totalorder %s644_s21, 3 }
   0xc   : > { %p194_p9 = pnand %p490_p7, %p193_p8 }
   0xd   : > { %v566_v0 = vld [vmem:[%s808_s1] sm:$0xff] (!%p194_p9)   ;;  %v646_v1 = vmov (!%p194_p9), 0.0   ;;  %v567_v2 = vld [vmem:[%s808_s1 + $0x8] sm:$0xff] (!%p194_p9)   ;;  %vm647_vm0 = vmmov (!%p194_p9), 0   ;;  %p225_p10 = scmp.lt.s32.totalorder (!%p194_p9), %s700_s22, 1  ;;  %v568_v3 = vld [vmem:[%s808_s1 + $0x10] sm:$0xff] (!%p194_p9)  }
   0xe   : > { %197 = sbr.rel (%p194_p9) target bundleno = 492 (0x1ec), region = 36  ;;  %513 = vmatprep.subr.bf16.mxu0 (!%p194_p9), %v646_v1  ;;  %521 = vmatprep.mubr.msk.bf16.mxu0 (!%p194_p9), %vm647_vm0, %v646_v1  ;;  %v569_v4 = vld [vmem:[%s808_s1 + $0x18] sm:$0xff] (!%p194_p9)   ;;  %vm282_vm1 = vcmask (!%p194_p9), 523264   ;;  %v495_v6 = vld [vmem:[%s809_s2] ss:$0 sm:$0xff] (!%p194_p9)  ;;  %vm338_vm2 = vcmask (!%p194_p9), 261120  }
   0xf   : > { %514 = vmatpush3.bf16.msra.mxu0 (!%p194_p9), %v566_v0  ;;  %v502_v13 = vld [vmem:[%s810_s3] ss:$0 sm:$0xff] (!%p194_p9)  ;;  %vm368_vm3 = vcmask (!%p194_p9), 7168   ;;  %s503_s11 = sshll.u32 (!%p194_p9), %s700_s22, 4  ;;  %vm384_vm4 = vcmask (!%p194_p9), 516096  }
  0x10   : > { %515 = vmatprep.subr.bf16.mxu0 (!%p194_p9), %v646_v1  ;;  %s765_s16 = scalar_lea.hbm (!%p194_p9), %s811_s4, %s503_s11 }
  0x13   : > { %516 = vmatpush3.bf16.msra.mxu0 (!%p194_p9), %v567_v2 }
  0x14   : > { %517 = vmatprep.subr.bf16.mxu0 (!%p194_p9), %v646_v1 }
  0x15   : > { %s735_s9 = scalar_select %p225_p10, %s700_s22, 1 }
  0x16   : > { %s648_s22 = smov [#allocation2]  }
  0x17   : > { %s506_s12 = sshll.u32 %s735_s9, 3  ;;  %518 = vmatpush3.bf16.msra.mxu0 %v568_v3  ;;  %s507_s6 = sshll.u32 %s735_s9, 4 }
  0x18   : > { %s229_s15 = scalar_lea.vmem %s807_s0, %s506_s12  ;;  %519 = vmatprep.subr.bf16.mxu0 %v646_v1  ;;  %s234_s10 = scalar_lea.vmem %s812_s5, %s507_s6 }
  0x19   : > { %v236_v5 = vld [vmem:[%s229_s15] sm:$0xff]   ;;  %s216_s9 = sand.u32 1, %s636_s19   ;;  %s586_s25 = sshll.u32 %s648_s22, 4  ;;  %s587_s25 = int_to_ptr.vmem [resolvable:$false] %s586_s25 }
  0x1a   : > { %v371_v42 = vunpack.c.l.bf16 %v236_v5  ;;  %v372_v43 = vunpack.c.h.bf16 %v236_v5  ;;  %s217_s12 = scalar_lea.vmem [#allocation2], %s216_s9  ;;  %s387_s17 = scalar_lea.sflag [#allocation3], %s216_s9 }
  0x1b   : > { %520 = vmatpush3.bf16.msra.mxu0 %v569_v4  ;;  %s404_s13 = sshll.u32 %s217_s12, 4  ;;  %s588_s26 = scalar_lea.vmem %s587_s25, 32  ;;  %s767_s13 = int_to_ptr.vmem [resolvable:$true] %s404_s13 }
  0x1c   : > { %s582_s23 = scalar_lea.vmem %s767_s13, 16  ;;  %p589_p0 = scmp.lt.s32.totalorder %s767_s13, %s587_s25 }
  0x1d   : > { %p583_p11 = scmp.ne.s32.totalorder %s767_s13, %s582_s23  ;;  %p590_p1 = scmp.lt.s32.totalorder %s588_s26, %s582_s23 }
  0x1e   : > { %522 = vmatmul.mubr.msk.bf16.vlgmr.msra.gmra.mrb[0].mxu0 %vm282_vm1, %v236_v5 }
  0x1f   : > { %p584_p12 = pnand %p583_p11, %p717_p5  ;;  %p591_p2 = por %p590_p1, %p589_p0 }
  0x21   : > { %p585_p13 = pneg %p584_p12 }
  0x23   : > { %p592_p3 = pnand %p591_p2, %p585_p13 }
  0xf1   : > { %v320_v7 = vpop.f32.mrb[0].mxu0 }
  0xf2   : > { %v321_v8 = vadd.f32 %v495_v6, %v320_v7  ;;  %v523_v9 = vpop.f32.mrb[1].mxu0 }
  0xf3   : > { %v323_v10 = vpop.f32.mrb[2].mxu0 }
  0xf4   : > { %572 = vtanh.f32 %v321_v8  ;;  %v324_v11 = vadd.f32 %v495_v6, %v323_v10  ;;  %v524_v12 = vpop.f32.mrb[3].mxu0 }
  0xf6   : > { %574 = vtanh.f32 %v324_v11 }
  0xfe   : > { %v573_v14 = vpop.eup %572 }
  0xff   : > { %v336_v15 = vmul.f32 %v573_v14, %v502_v13 }
 0x100   : > { %v575_v16 = vpop.eup %574 }
 0x101   : > { %v339_v17 = vsel %vm338_vm2, %v336_v15, 0.0  ;;  %v337_v18 = vmul.f32 %v575_v16, %v502_v13 }
 0x102   : > { %340 = vadd.xlane.f32.xlu0 %v339_v17 }
 0x103   : > { %v342_v19 = vsel %vm338_vm2, %v337_v18, 0.0 }
 0x106   : > { %343 = vadd.xlane.f32.xlu0 %v342_v19 }
 0x18f   : > { %v341_v20 = vpop.xlane.xlu0 %340 }
 0x193   : > { %v344_v21 = vpop.xlane.xlu0 %343 }
 0x194   : > { %v345_v22 = vmax.f32 %v341_v20, %v344_v21 }
 0x196   : > { %v346_v23 = vrot.slane %v345_v22, 4 }
 0x198   : > { %v347_v24 = vmax.f32 %v345_v22, %v346_v23 }
 0x19a   : > { %v348_v25 = vrot.slane %v347_v24, 2 }
 0x19c   : > { %v349_v26 = vmax.f32 %v347_v24, %v348_v25 }
 0x19e   : > { %v350_v27 = vrot.slane %v349_v26, 1 }
 0x1a0   : > { %v351_v28 = vmax.f32 %v349_v26, %v350_v27 }
 0x1a2   : > { %v352_v29 = vsub.f32 %v341_v20, %v351_v28  ;;  %v353_v30 = vsub.f32 %v344_v21, %v351_v28 }
 0x1a4   : > { %v354_v31 = vmul.f32 1.442695, %v352_v29  ;;  %v356_v32 = vmul.f32 1.442695, %v353_v30 }
 0x1a6   : > { %576 = vpow2.f32 %v354_v31 }
 0x1a7   : > { %578 = vpow2.f32 %v356_v32 }
 0x1b0   : > { %v577_v33 = vpop.eup %576 }
 0x1b1   : > { %v579_v34 = vpop.eup %578 }
 0x1b2   : > { %v358_v35 = vadd.f32 %v579_v34, %v577_v33 }
 0x1b4   : > { %v359_v36 = vrot.slane %v358_v35, 4 }
 0x1b6   : > { %v360_v37 = vadd.f32 %v359_v36, %v358_v35 }
 0x1b8   : > { %v361_v38 = vrot.slane %v360_v37, 2 }
 0x1ba   : > { %v362_v39 = vadd.f32 %v361_v38, %v360_v37 }
 0x1bc   : > { %v363_v40 = vrot.slane %v362_v39, 1 }
 0x1be   : > { %v364_v41 = vadd.f32 %v363_v40, %v362_v39 }
 0x1c0   : > { %580 = vrcp.f32 %v364_v41 }
 0x1ca   : > { %v581_v44 = vpop.eup %580 }
 0x1cb   : > { %v366_v45 = vmul.f32 %v581_v44, %v577_v33  ;;  %v367_v46 = vmul.f32 %v581_v44, %v579_v34 }
 0x1cd   : > { %369 = vst.msk [vmem:[%s234_s10] sm:$0xff] %vm368_vm3, %v366_v45  ;;  %370 = vst.msk [vmem:[%s234_s10 + $0x8] sm:$0xff] %vm368_vm3, %v367_v46  ;;  %v374_v47 = vmul.f32 %v372_v43, %v367_v46  ;;  %v373_v48 = vmul.f32 %v371_v42, %v366_v45 }
 0x1cf   : > { %v375_v49 = vsel %vm282_vm1, %v373_v48, 0.0  ;;  %v376_v50 = vsel %vm282_vm1, %v374_v47, 0.0 }
 0x1d0   : > { %v377_v51 = vadd.f32 %v376_v50, %v375_v49 }
 0x1d2   : > { %v378_v52 = vrot.slane %v377_v51, 4 }
 0x1d4   : > { %v379_v53 = vadd.f32 %v378_v52, %v377_v51 }
 0x1d6   : > { %v380_v54 = vrot.slane %v379_v53, 2 }
 0x1d8   : > { %v381_v55 = vadd.f32 %v380_v54, %v379_v53 }
 0x1da   : > { %v382_v56 = vrot.slane %v381_v55, 1 }
 0x1dc   : > { %v383_v57 = vadd.f32 %v382_v56, %v381_v55 }
 0x1de   : > { %385 = vst.msk [vmem:[%s217_s12] sm:$0x1] %vm384_vm4, %v383_v57 }
 0x1df   : > { %595 = shalt.err (!%p592_p3)
}
 0x1e0   : > { %s596_s30 = scalar_lea.hbm %s765_s16, 16  ;;  %s600_s8 = scalar_lea.hbm %s811_s4, 32 }
 0x1e1   : > { %p597_p4 = scmp.ne.s32.totalorder %s765_s16, %s596_s30  ;;  %p601_p9 = scmp.lt.u32.totalorder %s765_s16, %s811_s4 }
 0x1e2   : > { %p602_p10 = scmp.lt.u32.totalorder %s600_s8, %s596_s30  ;;  %p604_p12 = scmp.lt.u32.totalorder %s596_s30, %s765_s16 }
 0x1e3   : > { %p598_p7 = pnand %p597_p4, %p717_p5 }
 0x1e4   : > { %p603_p11 = por %p602_p10, %p601_p9 }
 0x1e5   : > { %p599_p8 = pneg %p598_p7 }
 0x1e6   : > { %p605_p13 = por %p604_p12, %p603_p11 }
 0x1e8   : > { %p606_p0 = pnand %p605_p13, %p599_p8 }
 0x1ea   : > { %609 = shalt.err (!%p606_p0)
}
 0x1eb   : > { %525 = dma.vmem_to_hbm [thread:$0]  (%p717_p5), %s767_s13, 16, %s765_s16, %s387_s17  }
 0x1ec PF: > { %p531_p1 = scmp.ge.s32.totalorder %s644_s21, 2  ;;  %s419_s11 = sand.u32 1, %s632_s18  }
 0x1ed   : > { %s420_s12 = scalar_lea.sflag [#allocation3], %s419_s11 }
 0x1ee   : > { %p528_p2 = pnand %p531_p1, %p721_p6 }
 0x1f0   : > { %627 = dma.done.wait (!%p528_p2), %s420_s12, 16  }
 0x1f1   : > { %629 = vsyncadd (!%p528_p2), %s420_s12, 4294967280  ;;  %p16_p3 = scmp.ge.s32.totalorder %s704_s24, 4   ;;  %s815_s18 = smov %s636_s19 }
 0x1f2   : > { %s816_s19 = smov %s640_s20  ;;  %s817_s20 = smov %s715_s27 }
 0x1f3   : > { %s818_s21 = smov %s704_s24  ;;  %18 = sbr.rel (!%p16_p3) target bundleno = 3 (0x3), region = 83 }
 0x1fa   :  { %432 = vsyncpa [#allocation3], 1 }
 0x1fb   :  { %434 = vsyncpa [#allocation3 + $0x1], 1 }

</bundles_post_ra>
